<compile_context>
chip_gen: v7x
topology: tpu7x:2x2x1
jax: 0.10.0
libtpu: 0.0.40
codegen_flags: <defaults>
</compile_context>

<pallas_src>
import numpy as np
import jax
import jax.numpy as jnp
from jax.experimental import pallas as pl
from jax.experimental.pallas import tpu as pltpu


def _round_up(x, m):
    return ((x + m - 1) // m) * m


def folding_kernel(cp1_ref, cp2_ref, gw1_ref,
                   w2_ref, b2_ref,
                   w3_ref, b3_ref,
                   w4r_ref,
                   w5_ref, b5_ref,
                   w6t_ref, b6t_ref,
                   out_ref):
    f32 = jnp.float32
    bf16 = jnp.bfloat16

    cp1 = cp1_ref[...]         # (1, H)  codeword projection, fold 1
    cp2 = cp2_ref[...]         # (1, H)  codeword projection + bias, fold 2
    w4r = w4r_ref[...]         # (3, H)  recon1 part of fold-2 layer-1 weight

    # ---- Folding 1: Conv1d(C+2->H) -> ReLU -> Conv1d(H->H) -> ReLU -> Conv1d(H->3)
    # First layer: grid part (+ b1) was hoisted to XLA, only the codeword add
    # remains (sublane-broadcast of a single row -> cheap on the VPU).
    h = jnp.maximum(gw1_ref[...] + cp1, 0.0)                        # (TM, H)
    h = jnp.maximum(
        jnp.dot(h.astype(bf16), w2_ref[...], preferred_element_type=f32)
        + b2_ref[...], 0.0)
    recon1 = (jnp.dot(h.astype(bf16), w3_ref[...], preferred_element_type=f32)
              + b3_ref[...])                                        # (TM, 3) f32

    # ---- Folding 2: Conv1d(C+3->H) -> ReLU -> Conv1d(H->H) -> ReLU -> Conv1d(H->3)
    # K=3 contraction done as f32 VPU broadcast FMAs (b4 already folded in cp2).
    h2 = (recon1[:, 0:1] * w4r[0:1, :]
          + recon1[:, 1:2] * w4r[1:2, :]
          + recon1[:, 2:3] * w4r[2:3, :]
          + cp2)
    h2 = jnp.maximum(h2, 0.0)
    h2 = jnp.maximum(
        jnp.dot(h2.astype(bf16), w5_ref[...], preferred_element_type=f32)
        + b5_ref[...], 0.0)

    # Lane-dense (3, TM) output: (3, H) @ (TM, H)^T, contraction over H.
    recon2 = jax.lax.dot_general(
        w6t_ref[...], h2.astype(bf16),
        (((1,), (1,)), ((), ())),
        preferred_element_type=f32) + b6t_ref[...]                  # (3, TM)
    out_ref[...] = recon2.astype(out_ref.dtype)


def make_params(key, in_channel, hidden):
    """Deterministic synthetic params, PyTorch-Conv1d-style uniform init.

    Full weights for layer i are (Ci, Co); layers taking concatenated inputs
    are split into the codeword part and the grid/recon part
    (cat([a, b]) @ W == a @ W_a + b @ W_b, exact)."""
    def uconv(k, ci, co):
        kw, kb = jax.random.split(k)
        bound = 1.0 / np.sqrt(ci)
        w = jax.random.uniform(kw, (ci, co), jnp.float32, -bound, bound)
        b = jax.random.uniform(kb, (1, co), jnp.float32, -bound, bound)
        return w, b

    C, H = in_channel, hidden
    ks = jax.random.split(key, 6)
    w1, b1 = uconv(ks[0], C + 2, H)   # folding1 layer 1, input = cat([code, grid2d])
    w2, b2 = uconv(ks[1], H, H)
    w3, b3 = uconv(ks[2], H, 3)
    w4, b4 = uconv(ks[3], C + 3, H)   # folding2 layer 1, input = cat([code, recon1])
    w5, b5 = uconv(ks[4], H, H)
    w6, b6 = uconv(ks[5], H, 3)
    return dict(
        w1c=w1[:C], w1g=w1[C:], b1=b1,
        w2=w2, b2=b2, w3=w3, b3=b3,
        w4c=w4[:C], w4r=w4[C:], b4=b4,
        w5=w5, b5=b5, w6=w6, b6=b6,
    )


def make_grid2d(side):
    """FoldingNet grid: meshgrid of linspace(-0.3, 0.3), flattened to (M, 2)."""
    lin = jnp.linspace(-0.3, 0.3, side, dtype=jnp.float32)
    gx, gy = jnp.meshgrid(lin, lin)
    return jnp.stack([gx.reshape(-1), gy.reshape(-1)], axis=-1)  # (side*side, 2)


def folding_decoder(x, grid2d, p, tm=512):
    """x: (N, C) codeword. Returns (N, 3, M) like the PyTorch Conv1d output."""
    N, C = x.shape
    M = grid2d.shape[0]
    H = p["w2"].shape[0]
    f32 = jnp.float32
    bf16 = jnp.bfloat16
    hi = jax.lax.Precision.HIGHEST

    # Lane-aligned point tile: TM multiple of 128, M padded to a multiple of TM.
    tm = _round_up(min(tm, _round_up(M, 128)), 128)
    m_pad = _round_up(M, tm)
    n_mt = m_pad // tm
    grid2d_p = jnp.pad(grid2d, ((0, m_pad - M), (0, 0)))

    # Hoisted, batch-independent grid projection of fold-1 layer 1 (bias fused).
    gw1b = jnp.dot(grid2d_p, p["w1g"], precision=hi) + p["b1"]      # (m_pad, H)
    # Hoisted per-sample codeword projections: one tiny dense matmul per fold.
    cp1 = jnp.dot(x, p["w1c"], precision=hi).reshape(N, 1, H)
    cp2 = (jnp.dot(x, p["w4c"], precision=hi) + p["b4"]).reshape(N, 1, H)

    # bf16 weights for the MXU matmuls (f32 accumulation inside the kernel).
    w2b = p["w2"].astype(bf16)
    w3b = p["w3"].astype(bf16)
    w5b = p["w5"].astype(bf16)
    w6t = p["w6"].T.astype(bf16)     # (3, H) -> lane-dense output matmul
    b6t = p["b6"].T                  # (3, 1)

    const = lambda shape: pl.BlockSpec(shape, lambda b, m: (0,) * len(shape))

    out = pl.pallas_call(
        folding_kernel,
        out_shape=jax.ShapeDtypeStruct((N, 3, m_pad), f32),
        grid_spec=pltpu.PrefetchScalarGridSpec(
            num_scalar_prefetch=0,
            grid=(N, n_mt),
            in_specs=[
                pl.BlockSpec((None, 1, H), lambda b, m: (b, 0, 0)),  # cp1
                pl.BlockSpec((None, 1, H), lambda b, m: (b, 0, 0)),  # cp2 (+b4)
                pl.BlockSpec((tm, H), lambda b, m: (m, 0)),          # gw1b tile
                const((H, H)), const((1, H)),                        # w2,  b2
                const((H, 3)), const((1, 3)),                        # w3,  b3
                const((3, H)),                                       # w4r
                const((H, H)), const((1, H)),                        # w5,  b5
                const((3, H)), const((3, 1)),                        # w6t, b6t
            ],
            out_specs=pl.BlockSpec((None, 3, tm), lambda b, m: (b, 0, m)),
        ),
        compiler_params=pltpu.CompilerParams(
            dimension_semantics=("parallel", "parallel"),
            vmem_limit_bytes=48 * 1024 * 1024),
    )(cp1, cp2, gw1b,
      w2b, p["b2"], w3b, p["b3"],
      p["w4r"],
      w5b, p["b5"], w6t, b6t)

    return out[:, :, :M]    # already in PyTorch NCM layout (N, 3, M)


def folding_decoder_ref(x, grid2d, p):
    """Pure-JAX reference (mirrors the PyTorch forward; the H-contraction
    matmuls per fold use bf16 inputs with f32 accumulation — the same
    precision policy and add ordering as the kernel)."""
    f32 = jnp.float32
    bf16 = jnp.bfloat16
    hi = jax.lax.Precision.HIGHEST
    w2 = p["w2"].astype(bf16); w3 = p["w3"].astype(bf16)
    w5 = p["w5"].astype(bf16); w6 = p["w6"].astype(bf16)

    gw1 = jnp.dot(grid2d, p["w1g"], precision=hi) + p["b1"]          # (M, H)
    cp1 = jnp.dot(x, p["w1c"], precision=hi)                         # (N, H)
    cp2 = jnp.dot(x, p["w4c"], precision=hi) + p["b4"]               # (N, H)

    h = jax.nn.relu(gw1[None] + cp1[:, None, :])                     # (N, M, H)
    h = jax.nn.relu(jnp.dot(h.astype(bf16), w2,
                            preferred_element_type=f32) + p["b2"])
    recon1 = jnp.dot(h.astype(bf16), w3,
                     preferred_element_type=f32) + p["b3"]           # (N, M, 3)

    h = jax.nn.relu(jnp.dot(recon1, p["w4r"], precision=hi)
                    + cp2[:, None, :])
    h = jax.nn.relu(jnp.dot(h.astype(bf16), w5,
                            preferred_element_type=f32) + p["b5"])
    recon2 = jnp.dot(h.astype(bf16), w6,
                     preferred_element_type=f32) + p["b6"]           # (N, M, 3)
    return jnp.transpose(recon2, (0, 2, 1))                          # (N, 3, M)


if __name__ == "__main__":
    # Small shapes: batch=2, codeword channels=32, hidden=64, 8x8 folding grid
    # (the real module uses in_channel=1000, hidden=512, 45x45 grid).
    N, C, H, SIDE = 2, 32, 64, 8

    key = jax.random.PRNGKey(0)
    k_x, k_p = jax.random.split(key)
    x = jax.random.normal(k_x, (N, C), jnp.float32)        # codeword
    grid2d = make_grid2d(SIDE)                              # (64, 2)
    params = make_params(k_p, C, H)

    out = folding_decoder(x, grid2d, params)
    out = jax.block_until_ready(out)

    ref = folding_decoder_ref(x, grid2d, params)
    assert out.shape == (N, 3, SIDE * SIDE)
    np.testing.assert_allclose(np.asarray(out), np.asarray(ref),
                               rtol=3e-3, atol=3e-3)
    print("KERNEL_OK")
</pallas_src>

<mosaic_0001>
module attributes {stable_mosaic.version = 11 : i64} {
  func.func @folding_kernel(%arg0: i32, %arg1: i32, %arg2: memref<1x1x64xf32, #tpu.memory_space<vmem>>, %arg3: memref<1x1x64xf32, #tpu.memory_space<vmem>>, %arg4: memref<128x64xf32, #tpu.memory_space<vmem>>, %arg5: memref<64x64xbf16, #tpu.memory_space<vmem>>, %arg6: memref<1x64xf32, #tpu.memory_space<vmem>>, %arg7: memref<64x3xbf16, #tpu.memory_space<vmem>>, %arg8: memref<1x3xf32, #tpu.memory_space<vmem>>, %arg9: memref<3x64xf32, #tpu.memory_space<vmem>>, %arg10: memref<64x64xbf16, #tpu.memory_space<vmem>>, %arg11: memref<1x64xf32, #tpu.memory_space<vmem>>, %arg12: memref<3x64xbf16, #tpu.memory_space<vmem>>, %arg13: memref<3x1xf32, #tpu.memory_space<vmem>>, %arg14: memref<1x3x128xf32, #tpu.memory_space<vmem>>) attributes {dimension_semantics = [#tpu.dimension_semantics<parallel>, #tpu.dimension_semantics<parallel>], iteration_bounds = array<i64: 2, 1>, scalar_prefetch = 0 : i64, scratch_operands = 0 : i64, tpu.core_type = #tpu.core_type<tc>, window_params = [{transform_indices = @transform_0, window_bounds = array<i64: 1, 1, 64>}, {transform_indices = @transform_1, window_bounds = array<i64: 1, 1, 64>}, {transform_indices = @transform_2, window_bounds = array<i64: 128, 64>}, {pipeline_mode = #tpu.pipeline_mode<synchronous>, transform_indices = @transform_3, window_bounds = array<i64: 64, 64>}, {pipeline_mode = #tpu.pipeline_mode<synchronous>, transform_indices = @transform_4, window_bounds = array<i64: 1, 64>}, {pipeline_mode = #tpu.pipeline_mode<synchronous>, transform_indices = @transform_5, window_bounds = array<i64: 64, 3>}, {pipeline_mode = #tpu.pipeline_mode<synchronous>, transform_indices = @transform_6, window_bounds = array<i64: 1, 3>}, {pipeline_mode = #tpu.pipeline_mode<synchronous>, transform_indices = @transform_7, window_bounds = array<i64: 3, 64>}, {pipeline_mode = #tpu.pipeline_mode<synchronous>, transform_indices = @transform_8, window_bounds = array<i64: 64, 64>}, {pipeline_mode = #tpu.pipeline_mode<synchronous>, transform_indices = @transform_9, window_bounds = array<i64: 1, 64>}, {pipeline_mode = #tpu.pipeline_mode<synchronous>, transform_indices = @transform_10, window_bounds = array<i64: 3, 64>}, {pipeline_mode = #tpu.pipeline_mode<synchronous>, transform_indices = @transform_11, window_bounds = array<i64: 3, 1>}, {transform_indices = @transform_12, window_bounds = array<i64: 1, 3, 128>}]} {
    %c0 = arith.constant 0 : index
    %c0_0 = arith.constant 0 : index
    %c0_1 = arith.constant 0 : index
    %0 = vector.load %arg2[%c0, %c0_0, %c0_1] : memref<1x1x64xf32, #tpu.memory_space<vmem>>, vector<1x1x64xf32>
    %1 = vector.shape_cast %0 : vector<1x1x64xf32> to vector<1x64xf32>
    %c0_2 = arith.constant 0 : index
    %c0_3 = arith.constant 0 : index
    %c0_4 = arith.constant 0 : index
    %2 = vector.load %arg3[%c0_2, %c0_3, %c0_4] : memref<1x1x64xf32, #tpu.memory_space<vmem>>, vector<1x1x64xf32>
    %3 = vector.shape_cast %2 : vector<1x1x64xf32> to vector<1x64xf32>
    %c0_5 = arith.constant 0 : index
    %c0_6 = arith.constant 0 : index
    %4 = vector.load %arg9[%c0_5, %c0_6] : memref<3x64xf32, #tpu.memory_space<vmem>>, vector<3x64xf32>
    %c0_7 = arith.constant 0 : index
    %c0_8 = arith.constant 0 : index
    %5 = vector.load %arg4[%c0_7, %c0_8] : memref<128x64xf32, #tpu.memory_space<vmem>>, vector<128x64xf32>
    %6 = vector.broadcast %1 : vector<1x64xf32> to vector<128x64xf32>
    %7 = arith.addf %5, %6 : vector<128x64xf32>
    %cst = arith.constant 0.000000e+00 : f32
    %8 = vector.broadcast %cst : f32 to vector<128x64xf32>
    %9 = arith.maximumf %7, %8 : vector<128x64xf32>
    %10 = arith.truncf %9 : vector<128x64xf32> to vector<128x64xbf16>
    %c0_9 = arith.constant 0 : index
    %c0_10 = arith.constant 0 : index
    %11 = vector.load %arg5[%c0_9, %c0_10] : memref<64x64xbf16, #tpu.memory_space<vmem>>, vector<64x64xbf16>
    %cst_11 = arith.constant dense<0.000000e+00> : vector<128x64xf32>
    %12 = tpu.matmul %10, %11, %cst_11 {dimension_numbers = #tpu.dot_dimension_numbers<[1], [0], [0], [1], [0, 0, 1, 1], [], []>} : vector<128x64xbf16>, vector<64x64xbf16>, vector<128x64xf32> -> vector<128x64xf32>
    %c0_12 = arith.constant 0 : index
    %c0_13 = arith.constant 0 : index
    %13 = vector.load %arg6[%c0_12, %c0_13] : memref<1x64xf32, #tpu.memory_space<vmem>>, vector<1x64xf32>
    %14 = vector.broadcast %13 : vector<1x64xf32> to vector<128x64xf32>
    %15 = arith.addf %12, %14 : vector<128x64xf32>
    %cst_14 = arith.constant 0.000000e+00 : f32
    %16 = vector.broadcast %cst_14 : f32 to vector<128x64xf32>
    %17 = arith.maximumf %15, %16 : vector<128x64xf32>
    %18 = arith.truncf %17 : vector<128x64xf32> to vector<128x64xbf16>
    %c0_15 = arith.constant 0 : index
    %c0_16 = arith.constant 0 : index
    %19 = vector.load %arg7[%c0_15, %c0_16] : memref<64x3xbf16, #tpu.memory_space<vmem>>, vector<64x3xbf16>
    %cst_17 = arith.constant dense<0.000000e+00> : vector<128x3xf32>
    %20 = tpu.matmul %18, %19, %cst_17 {dimension_numbers = #tpu.dot_dimension_numbers<[1], [0], [0], [1], [0, 0, 1, 1], [], []>} : vector<128x64xbf16>, vector<64x3xbf16>, vector<128x3xf32> -> vector<128x3xf32>
    %c0_18 = arith.constant 0 : index
    %c0_19 = arith.constant 0 : index
    %21 = vector.load %arg8[%c0_18, %c0_19] : memref<1x3xf32, #tpu.memory_space<vmem>>, vector<1x3xf32>
    %22 = vector.broadcast %21 : vector<1x3xf32> to vector<128x3xf32>
    %23 = arith.addf %20, %22 : vector<128x3xf32>
    %24 = vector.extract_strided_slice %23 {offsets = [0, 0], sizes = [128, 1], strides = [1, 1]} : vector<128x3xf32> to vector<128x1xf32>
    %25 = vector.extract_strided_slice %4 {offsets = [0, 0], sizes = [1, 64], strides = [1, 1]} : vector<3x64xf32> to vector<1x64xf32>
    %26 = vector.broadcast %24 : vector<128x1xf32> to vector<128x64xf32>
    %27 = vector.broadcast %25 : vector<1x64xf32> to vector<128x64xf32>
    %28 = arith.mulf %26, %27 : vector<128x64xf32>
    %29 = vector.extract_strided_slice %23 {offsets = [0, 1], sizes = [128, 1], strides = [1, 1]} : vector<128x3xf32> to vector<128x1xf32>
    %30 = vector.extract_strided_slice %4 {offsets = [1, 0], sizes = [1, 64], strides = [1, 1]} : vector<3x64xf32> to vector<1x64xf32>
    %31 = vector.broadcast %29 : vector<128x1xf32> to vector<128x64xf32>
    %32 = vector.broadcast %30 : vector<1x64xf32> to vector<128x64xf32>
    %33 = arith.mulf %31, %32 : vector<128x64xf32>
    %34 = arith.addf %28, %33 : vector<128x64xf32>
    %35 = vector.extract_strided_slice %23 {offsets = [0, 2], sizes = [128, 1], strides = [1, 1]} : vector<128x3xf32> to vector<128x1xf32>
    %36 = vector.extract_strided_slice %4 {offsets = [2, 0], sizes = [1, 64], strides = [1, 1]} : vector<3x64xf32> to vector<1x64xf32>
    %37 = vector.broadcast %35 : vector<128x1xf32> to vector<128x64xf32>
    %38 = vector.broadcast %36 : vector<1x64xf32> to vector<128x64xf32>
    %39 = arith.mulf %37, %38 : vector<128x64xf32>
    %40 = arith.addf %34, %39 : vector<128x64xf32>
    %41 = vector.broadcast %3 : vector<1x64xf32> to vector<128x64xf32>
    %42 = arith.addf %40, %41 : vector<128x64xf32>
    %cst_20 = arith.constant 0.000000e+00 : f32
    %43 = vector.broadcast %cst_20 : f32 to vector<128x64xf32>
    %44 = arith.maximumf %42, %43 : vector<128x64xf32>
    %45 = arith.truncf %44 : vector<128x64xf32> to vector<128x64xbf16>
    %c0_21 = arith.constant 0 : index
    %c0_22 = arith.constant 0 : index
    %46 = vector.load %arg10[%c0_21, %c0_22] : memref<64x64xbf16, #tpu.memory_space<vmem>>, vector<64x64xbf16>
    %cst_23 = arith.constant dense<0.000000e+00> : vector<128x64xf32>
    %47 = tpu.matmul %45, %46, %cst_23 {dimension_numbers = #tpu.dot_dimension_numbers<[1], [0], [0], [1], [0, 0, 1, 1], [], []>} : vector<128x64xbf16>, vector<64x64xbf16>, vector<128x64xf32> -> vector<128x64xf32>
    %c0_24 = arith.constant 0 : index
    %c0_25 = arith.constant 0 : index
    %48 = vector.load %arg11[%c0_24, %c0_25] : memref<1x64xf32, #tpu.memory_space<vmem>>, vector<1x64xf32>
    %49 = vector.broadcast %48 : vector<1x64xf32> to vector<128x64xf32>
    %50 = arith.addf %47, %49 : vector<128x64xf32>
    %cst_26 = arith.constant 0.000000e+00 : f32
    %51 = vector.broadcast %cst_26 : f32 to vector<128x64xf32>
    %52 = arith.maximumf %50, %51 : vector<128x64xf32>
    %c0_27 = arith.constant 0 : index
    %c0_28 = arith.constant 0 : index
    %53 = vector.load %arg12[%c0_27, %c0_28] : memref<3x64xbf16, #tpu.memory_space<vmem>>, vector<3x64xbf16>
    %54 = arith.truncf %52 : vector<128x64xf32> to vector<128x64xbf16>
    %cst_29 = arith.constant dense<0.000000e+00> : vector<3x128xf32>
    %55 = tpu.matmul %53, %54, %cst_29 {dimension_numbers = #tpu.dot_dimension_numbers<[1], [1], [0], [0], [0, 0, 1, 0], [], []>} : vector<3x64xbf16>, vector<128x64xbf16>, vector<3x128xf32> -> vector<3x128xf32>
    %c0_30 = arith.constant 0 : index
    %c0_31 = arith.constant 0 : index
    %56 = vector.load %arg13[%c0_30, %c0_31] : memref<3x1xf32, #tpu.memory_space<vmem>>, vector<3x1xf32>
    %57 = vector.broadcast %56 : vector<3x1xf32> to vector<3x128xf32>
    %58 = arith.addf %55, %57 : vector<3x128xf32>
    %c0_32 = arith.constant 0 : index
    %c0_33 = arith.constant 0 : index
    %c0_34 = arith.constant 0 : index
    %59 = vector.load %arg14[%c0_32, %c0_33, %c0_34] : memref<1x3x128xf32, #tpu.memory_space<vmem>>, vector<1x3x128xf32>
    %60 = vector.shape_cast %59 : vector<1x3x128xf32> to vector<3x128xf32>
    %61 = vector.shape_cast %58 : vector<3x128xf32> to vector<1x3x128xf32>
    tpu.vector_store %arg14[%c0_32, %c0_33, %c0_34], %61 {strides = array<i32>} : memref<1x3x128xf32, #tpu.memory_space<vmem>>, vector<1x3x128xf32>,
    return
  }
  func.func @transform_0(%arg0: i32, %arg1: i32) -> (i32, i32, i32) {
    %c0_i32 = arith.constant 0 : i32
    %c0_i32_0 = arith.constant 0 : i32
    %c0_i32_1 = arith.constant 0 : i32
    return %arg0, %c0_i32, %c0_i32_0 : i32, i32, i32
  }
  func.func @transform_1(%arg0: i32, %arg1: i32) -> (i32, i32, i32) {
    %c0_i32 = arith.constant 0 : i32
    %c0_i32_0 = arith.constant 0 : i32
    %c0_i32_1 = arith.constant 0 : i32
    return %arg0, %c0_i32, %c0_i32_0 : i32, i32, i32
  }
  func.func @transform_2(%arg0: i32, %arg1: i32) -> (i32, i32) {
    %c0_i32 = arith.constant 0 : i32
    %c0_i32_0 = arith.constant 0 : i32
    return %arg1, %c0_i32 : i32, i32
  }
  func.func @transform_3(%arg0: i32, %arg1: i32) -> (i32, i32) {
    %c0_i32 = arith.constant 0 : i32
    %c0_i32_0 = arith.constant 0 : i32
    %c0_i32_1 = arith.constant 0 : i32
    return %c0_i32, %c0_i32_0 : i32, i32
  }
  func.func @transform_4(%arg0: i32, %arg1: i32) -> (i32, i32) {
    %c0_i32 = arith.constant 0 : i32
    %c0_i32_0 = arith.constant 0 : i32
    %c0_i32_1 = arith.constant 0 : i32
    return %c0_i32, %c0_i32_0 : i32, i32
  }
  func.func @transform_5(%arg0: i32, %arg1: i32) -> (i32, i32) {
    %c0_i32 = arith.constant 0 : i32
    %c0_i32_0 = arith.constant 0 : i32
    %c0_i32_1 = arith.constant 0 : i32
    return %c0_i32, %c0_i32_0 : i32, i32
  }
  func.func @transform_6(%arg0: i32, %arg1: i32) -> (i32, i32) {
    %c0_i32 = arith.constant 0 : i32
    %c0_i32_0 = arith.constant 0 : i32
    %c0_i32_1 = arith.constant 0 : i32
    return %c0_i32, %c0_i32_0 : i32, i32
  }
  func.func @transform_7(%arg0: i32, %arg1: i32) -> (i32, i32) {
    %c0_i32 = arith.constant 0 : i32
    %c0_i32_0 = arith.constant 0 : i32
    %c0_i32_1 = arith.constant 0 : i32
    return %c0_i32, %c0_i32_0 : i32, i32
  }
  func.func @transform_8(%arg0: i32, %arg1: i32) -> (i32, i32) {
    %c0_i32 = arith.constant 0 : i32
    %c0_i32_0 = arith.constant 0 : i32
    %c0_i32_1 = arith.constant 0 : i32
    return %c0_i32, %c0_i32_0 : i32, i32
  }
  func.func @transform_9(%arg0: i32, %arg1: i32) -> (i32, i32) {
    %c0_i32 = arith.constant 0 : i32
    %c0_i32_0 = arith.constant 0 : i32
    %c0_i32_1 = arith.constant 0 : i32
    return %c0_i32, %c0_i32_0 : i32, i32
  }
  func.func @transform_10(%arg0: i32, %arg1: i32) -> (i32, i32) {
    %c0_i32 = arith.constant 0 : i32
    %c0_i32_0 = arith.constant 0 : i32
    %c0_i32_1 = arith.constant 0 : i32
    return %c0_i32, %c0_i32_0 : i32, i32
  }
  func.func @transform_11(%arg0: i32, %arg1: i32) -> (i32, i32) {
    %c0_i32 = arith.constant 0 : i32
    %c0_i32_0 = arith.constant 0 : i32
    %c0_i32_1 = arith.constant 0 : i32
    return %c0_i32, %c0_i32_0 : i32, i32
  }
  func.func @transform_12(%arg0: i32, %arg1: i32) -> (i32, i32, i32) {
    %c0_i32 = arith.constant 0 : i32
    %c0_i32_0 = arith.constant 0 : i32
    return %arg0, %c0_i32, %arg1 : i32, i32, i32
  }
}

</mosaic_0001>

<bundles_post_ra>
// kernel: tpu_custom_call.1
= control target key start
LH: loop header
LB: loop body
LE: loop exit
PB: predicated region body
PF: predicated region fallthrough
CT: control target
= control target key end

     0   :  { %s1940_s21 = smov 0   ;;  %s1942_s22 = smov 0   ;;  %s2327_s0 = inlined_call_operand.vmem [shape: f32[2,1,64], index: 0, kind: input, shape index: {}]   ;;  %s2328_s1 = inlined_call_operand.vmem [shape: f32[2,1,64], index: 1, kind: input, shape index: {}]   ;;  %s2329_s2 = inlined_call_operand.vmem [shape: f32[128,64], index: 2, kind: input, shape index: {}]   ;;  %s2330_s3 = inlined_call_operand.vmem [shape: bf16[64,64], index: 3, kind: input, shape index: {}]   ;;  %s2331_s4 = inlined_call_operand.vmem [shape: f32[1,64], index: 4, kind: input, shape index: {}]   ;;  %s2332_s5 = inlined_call_operand.vmem [shape: bf16[64,3], index: 5, kind: input, shape index: {}]   ;;  %s2333_s6 = inlined_call_operand.vmem [shape: f32[1,3], index: 6, kind: input, shape index: {}]   ;;  %s2334_s7 = inlined_call_operand.vmem [shape: f32[3,64], index: 7, kind: input, shape index: {}]   ;;  %s2335_s8 = inlined_call_operand.vmem [shape: bf16[64,64], index: 8, kind: input, shape index: {}]   ;;  %s2336_s9 = inlined_call_operand.vmem [shape: f32[1,64], index: 9, kind: input, shape index: {}]   ;;  %s2337_s10 = inlined_call_operand.vmem [shape: bf16[3,64], index: 10, kind: input, shape index: {}]   ;;  %s2338_s11 = inlined_call_operand.vmem [shape: f32[3,1], index: 11, kind: input, shape index: {}]   ;;  %s2339_s12 = inlined_call_operand.vmem [shape: f32[2,3,128], index: 12, kind: output, shape index: {}]  }
   0x1   :  { %s1944_s23 = smov 0  }
   0x2 LB: > { %s34_s24 = sadd.s32 1, %s1864_s22  ;;  %p1576_p0 = scmp.ge.s32.totalorder %s1868_s23, 1  ;;  %s1868_s23 = sphi %s1944_s23, %s22_s23   ;;  %s1864_s22 = sphi %s1942_s22, %s2341_s22   ;;  %s1860_s21 = sphi %s1940_s21, %s2340_s21  }
   0x3   : > { %p36_p1 = scmp.ge.s32.totalorder %s34_s24, 2  ;;  %p393_p2 = scmp.lt.s32.totalorder %s1868_s23, 3 }
   0x5   : > { %s2343_s24 = smov (%p36_p1, %s34_s24), 0  ;;  %p394_p3 = pnand %p1576_p0, %p393_p2 }
   0x6   : > { %v1834_v0 = vld [vmem:[%s2330_s3] sm:$0xff] (!%p394_p3)   ;;  %p443_p4 = scmp.lt.s32.totalorder (!%p394_p3), %s1860_s21, 1  ;;  %v1835_v1 = vld [vmem:[%s2330_s3 + $0x8] sm:$0xff] (!%p394_p3)   ;;  %v1836_v2 = vld [vmem:[%s2330_s3 + $0x10] sm:$0xff] (!%p394_p3)   ;;  %vm567_vm0 = vcmask (!%p394_p3), 523264   ;;  %vm1874_vm1 = vmmov (!%p394_p3), 0  }
   0x7   : > { %397 = sbr.rel (%p394_p3) target bundleno = 1188 (0x4a4), region = 68  ;;  %1667 = vmatprep.subr.bf16.mxu0 (!%p394_p3), %v1834_v0  ;;  %v466_v3 = vld [vmem:[%s2329_s2] sm:$0xff] (!%p394_p3)  ;;  %v467_v4 = vld [vmem:[%s2329_s2 + $0x8] sm:$0xff] (!%p394_p3)  ;;  %v468_v5 = vld [vmem:[%s2329_s2 + $0x10] sm:$0xff] (!%p394_p3) }
   0x8   : > { %1668 = vmatpush3.bf16.msra.mxu0 (!%p394_p3), %v1834_v0  ;;  %v469_v7 = vld [vmem:[%s2329_s2 + $0x18] sm:$0xff] (!%p394_p3)  ;;  %v470_v8 = vld [vmem:[%s2329_s2 + $0x20] sm:$0xff] (!%p394_p3)  ;;  %v471_v13 = vld [vmem:[%s2329_s2 + $0x28] sm:$0xff] (!%p394_p3) }
   0x9   : > { %1669 = vmatprep.subr.bf16.mxu0 (!%p394_p3), %v1835_v1  ;;  %v1837_v16 = vld [vmem:[%s2330_s3 + $0x18] sm:$0xff] (!%p394_p3)   ;;  %v472_v20 = vld [vmem:[%s2329_s2 + $0x30] sm:$0xff] (!%p394_p3)  ;;  %v474_v25 = vld [vmem:[%s2329_s2 + $0x40] sm:$0xff] (!%p394_p3) }
   0xa   : > { %v473_v21 = vld [vmem:[%s2329_s2 + $0x38] sm:$0xff] (!%p394_p3)  ;;  %v1838_v27 = vld [vmem:[%s2332_s5] sm:$0xff] (!%p394_p3)   ;;  %v475_v28 = vld [vmem:[%s2329_s2 + $0x48] sm:$0xff] (!%p394_p3) }
   0xb   : > { %v1839_v29 = vld [vmem:[%s2332_s5 + $0x8] sm:$0xff] (!%p394_p3)   ;;  %1691 = vmatprep.subr.bf16.mxu1 (!%p394_p3), %v1838_v27  ;;  %v476_v40 = vld [vmem:[%s2329_s2 + $0x50] sm:$0xff] (!%p394_p3)  ;;  %v477_v41 = vld [vmem:[%s2329_s2 + $0x58] sm:$0xff] (!%p394_p3) }
   0xc   : > { %1670 = vmatpush3.bf16.msra.mxu0 (!%p394_p3), %v1835_v1  ;;  %1692 = vmatpush3.bf16.msra.mxu1 (!%p394_p3), %v1838_v27  ;;  %v478_v42 = vld [vmem:[%s2329_s2 + $0x60] sm:$0xff] (!%p394_p3)  ;;  %v479_v43 = vld [vmem:[%s2329_s2 + $0x68] sm:$0xff] (!%p394_p3)  ;;  %v480_v54 = vld [vmem:[%s2329_s2 + $0x70] sm:$0xff] (!%p394_p3) }
   0xd   : > { %1671 = vmatprep.subr.bf16.mxu0 (!%p394_p3), %v1836_v2  ;;  %1693 = vmatprep.subr.bf16.mxu1 (!%p394_p3), %v1839_v29  ;;  %v481_v55 = vld [vmem:[%s2329_s2 + $0x78] sm:$0xff] (!%p394_p3)  ;;  %v1840_v63 = vld [vmem:[%s2332_s5 + $0x10] sm:$0xff] (!%p394_p3)   ;;  %v1579_v1 = vld [vmem:[%s2331_s4] ss:$0 sm:$0xff] (!%p394_p3) }
   0xe   : > { %s2345_s21 = smov (!%p443_p4, %s1860_s21), 1  ;;  %v1841_v0 = vld [vmem:[%s2332_s5 + $0x18] sm:$0xff]  }
   0xf   : > { %s445_s15 = scalar_lea.vmem %s2327_s0, %s2345_s21  ;;  %s448_s18 = scalar_lea.vmem %s2328_s1, %s2345_s21 }
  0x10   : > { %v1982_v6 = vld [vmem:[%s445_s15] ss:$0 sm:$0xff]  ;;  %1672 = vmatpush3.bf16.msra.mxu0 %v1836_v2  ;;  %1694 = vmatpush3.bf16.msra.mxu1 %v1839_v29  ;;  %s1577_s29 = sshll.u32 %s2345_s21, 2 }
  0x11   : > { %v488_v9 = vadd.f32 %v1982_v6, %v466_v3  ;;  %v489_v10 = vadd.f32 %v1982_v6, %v467_v4  ;;  %v490_v11 = vadd.f32 %v1982_v6, %v468_v5  ;;  %v491_v12 = vadd.f32 %v1982_v6, %v469_v7  ;;  %1673 = vmatprep.subr.bf16.mxu0 %v1837_v16  ;;  %s461_s14 = scalar_lea.vmem %s2339_s12, %s1577_s29 }
  0x12   : > { %v492_v14 = vadd.f32 %v1982_v6, %v470_v8  ;;  %v493_v15 = vadd.f32 %v1982_v6, %v471_v13  ;;  %v494_v31 = vadd.f32 %v1982_v6, %v472_v20  ;;  %v495_v32 = vadd.f32 %v1982_v6, %v473_v21  ;;  %1695 = vmatprep.subr.bf16.mxu1 %v1840_v63 }
  0x13   : > { %v504_v17 = vmax.f32 %v488_v9, 0.0  ;;  %v505_v18 = vmax.f32 %v489_v10, 0.0  ;;  %v506_v19 = vmax.f32 %v490_v11, 0.0  ;;  %v507_v23 = vmax.f32 %v491_v12, 0.0 }
  0x14   : > { %v508_v24 = vmax.f32 %v492_v14, 0.0  ;;  %v509_v26 = vmax.f32 %v493_v15, 0.0  ;;  %1674 = vmatpush3.bf16.msra.mxu0 %v1837_v16  ;;  %v496_v34 = vadd.f32 %v1982_v6, %v474_v25  ;;  %v497_v35 = vadd.f32 %v1982_v6, %v475_v28  ;;  %1696 = vmatpush3.bf16.msra.mxu1 %v1840_v63 }
  0x15   : > { %v520_v22 = vpack.c.bf16 %v505_v18, %v504_v17  ;;  %v521_v30 = vpack.c.bf16 %v507_v23, %v506_v19  ;;  %v510_v36 = vmax.f32 %v494_v31, 0.0  ;;  %v511_v37 = vmax.f32 %v495_v32, 0.0  ;;  %1697 = vmatprep.subr.bf16.mxu1 %v1841_v0 }
  0x16   : > { %v522_v33 = vpack.c.bf16 %v509_v26, %v508_v24  ;;  %v512_v38 = vmax.f32 %v496_v34, 0.0  ;;  %v513_v39 = vmax.f32 %v497_v35, 0.0  ;;  %v498_v45 = vadd.f32 %v1982_v6, %v476_v40 }
  0x17   : > { %1675 = vmatprep.mubr.msk.bf16.mxu0 %vm567_vm0, %v520_v22  ;;  %v523_v44 = vpack.c.bf16 %v511_v37, %v510_v36  ;;  %v499_v46 = vadd.f32 %v1982_v6, %v477_v41  ;;  %v500_v48 = vadd.f32 %v1982_v6, %v478_v42  ;;  %v501_v49 = vadd.f32 %v1982_v6, %v479_v43 }
  0x18   : > { %1676 = vmatmul.mubr.msk.bf16.vlgmr.msra.gmra.mrb[0].mxu0 %vm567_vm0, %v521_v30  ;;  %v524_v47 = vpack.c.bf16 %v513_v39, %v512_v38  ;;  %v514_v50 = vmax.f32 %v498_v45, 0.0  ;;  %v502_v57 = vadd.f32 %v1982_v6, %v480_v54  ;;  %v503_v58 = vadd.f32 %v1982_v6, %v481_v55  ;;  %1698 = vmatpush3.bf16.msra.mxu1 %v1841_v0 }
  0x19   : > { %1679 = vmatprep.mubr.msk.bf16.mxu0 %vm567_vm0, %v522_v33  ;;  %v515_v51 = vmax.f32 %v499_v46, 0.0  ;;  %v516_v52 = vmax.f32 %v500_v48, 0.0  ;;  %v517_v53 = vmax.f32 %v501_v49, 0.0 }
  0x1a   : > { %v518_v60 = vmax.f32 %v502_v57, 0.0  ;;  %v519_v61 = vmax.f32 %v503_v58, 0.0  ;;  %v1870_v58 = vmov 2  }
  0x1b   : > { %v525_v56 = vpack.c.bf16 %v515_v51, %v514_v50  ;;  %v526_v59 = vpack.c.bf16 %v517_v53, %v516_v52  ;;  %1790 = vset.pattern.permute.xlu1 %v1870_v58 }
  0x1c   : > { %v527_v62 = vpack.c.bf16 %v519_v61, %v518_v60  ;;  %v2078_v60 = vld [vmem:[%s2333_s6] ss:$0 sm:$0xff] }
  0x20   : > { %1680 = vmatmul.mubr.msk.bf16.gmra.mrb[4].mxu0 %vm567_vm0, %v523_v44 }
  0x21   : > { %1683 = vmatprep.mubr.msk.bf16.mxu0 %vm567_vm0, %v524_v47 }
  0x28   : > { %1684 = vmatmul.mubr.msk.bf16.gmra.mrb[8].mxu0 %vm567_vm0, %v525_v56 }
  0x29   : > { %1687 = vmatprep.mubr.msk.bf16.mxu0 %vm567_vm0, %v526_v59  ;;  %v1871_v59 = vmov 0  }
  0x2a   : > { %1788 = vset.pattern.permute.xlu0 %v1871_v59 }
  0x30   : > { %1688 = vmatmul.mubr.msk.bf16.gmra.mrb[12].mxu0 %vm567_vm0, %v527_v62 }
  0xeb   : > { %v1677_v2 = vpop.f32.mrb[0].mxu0 }
  0xec   : > { %v635_v3 = vadd.f32 %v1677_v2, %v1579_v1  ;;  %v626_v4 = vpop.f32.mrb[1].mxu0 }
  0xed   : > { %v627_v5 = vadd.f32 %v1579_v1, %v626_v4  ;;  %v1678_v6 = vpop.f32.mrb[2].mxu0 }
  0xee   : > { %v638_v7 = vadd.f32 %v1678_v6, %v1579_v1  ;;  %v629_v8 = vpop.f32.mrb[3].mxu0  ;;  %v691_v10 = vmax.f32 %v635_v3, 0.0  ;;  %v1872_v3 = vmov 1  }
  0xef   : > { %v630_v9 = vadd.f32 %v1579_v1, %v629_v8  ;;  %v689_v12 = vmax.f32 %v627_v5, 0.0 }
  0xf0   : > { %v692_v11 = vmax.f32 %v638_v7, 0.0 }
  0xf1   : > { %v690_v13 = vmax.f32 %v630_v9, 0.0 }
  0xf2   : > { %v706_v14 = vpack.c.bf16 %v692_v11, %v691_v10 }
  0xf3   : > { %v705_v15 = vpack.c.bf16 %v690_v13, %v689_v12  ;;  %v1681_v16 = vpop.f32.mrb[4].mxu0 }
  0xf4   : > { %v651_v17 = vadd.f32 %v1681_v16, %v1579_v1  ;;  %v642_v18 = vpop.f32.mrb[5].mxu0 }
  0xf5   : > { %1699 = vmatprep.mubr.msk.bf16.mxu1 %vm567_vm0, %v705_v15  ;;  %v643_v19 = vadd.f32 %v1579_v1, %v642_v18  ;;  %v1682_v20 = vpop.f32.mrb[6].mxu0 }
  0xf6   : > { %1700 = vmatmul.mubr.msk.bf16.vlgmr.msra.gmra.mrb[0].mxu1 %vm567_vm0, %v706_v14  ;;  %v695_v21 = vmax.f32 %v651_v17, 0.0  ;;  %v654_v22 = vadd.f32 %v1682_v20, %v1579_v1  ;;  %v645_v23 = vpop.f32.mrb[7].mxu0 }
  0xf7   : > { %v693_v24 = vmax.f32 %v643_v19, 0.0  ;;  %v646_v25 = vadd.f32 %v1579_v1, %v645_v23 }
  0xf8   : > { %v696_v26 = vmax.f32 %v654_v22, 0.0 }
  0xf9   : > { %v694_v27 = vmax.f32 %v646_v25, 0.0 }
  0xfa   : > { %v708_v28 = vpack.c.bf16 %v696_v26, %v695_v21  ;;  %v1842_v26 = vld [vmem:[%s2335_s8] sm:$0xff]  }
  0xfb   : > { %v707_v29 = vpack.c.bf16 %v694_v27, %v693_v24  ;;  %v1685_v30 = vpop.f32.mrb[8].mxu0  ;;  %1715 = vmatprep.subr.bf16.mxu0 %v1842_v26  ;;  %v1843_v27 = vld [vmem:[%s2335_s8 + $0x8] sm:$0xff]  }
  0xfc   : > { %v667_v31 = vadd.f32 %v1685_v30, %v1579_v1  ;;  %v658_v32 = vpop.f32.mrb[9].mxu0  ;;  %1716 = vmatpush3.bf16.msra.mxu0 %v1842_v26  ;;  %v1845_v30 = vld [vmem:[%s2335_s8 + $0x18] sm:$0xff]  }
  0xfd   : > { %1703 = vmatprep.mubr.msk.bf16.mxu1 %vm567_vm0, %v707_v29  ;;  %v659_v33 = vadd.f32 %v1579_v1, %v658_v32  ;;  %v1686_v34 = vpop.f32.mrb[10].mxu0  ;;  %1717 = vmatprep.subr.bf16.mxu0 %v1843_v27 }
  0xfe   : > { %1704 = vmatmul.mubr.msk.bf16.gmra.mrb[4].mxu1 %vm567_vm0, %v708_v28  ;;  %v699_v35 = vmax.f32 %v667_v31, 0.0  ;;  %v670_v36 = vadd.f32 %v1686_v34, %v1579_v1  ;;  %v661_v37 = vpop.f32.mrb[11].mxu0  ;;  %v1844_v28 = vld [vmem:[%s2335_s8 + $0x10] sm:$0xff]  }
  0xff   : > { %v697_v38 = vmax.f32 %v659_v33, 0.0  ;;  %v662_v39 = vadd.f32 %v1579_v1, %v661_v37  ;;  %v953_v37 = vlaneseq }
 0x100   : > { %v700_v40 = vmax.f32 %v670_v36, 0.0  ;;  %1718 = vmatpush3.bf16.msra.mxu0 %v1843_v27 }
 0x101   : > { %v698_v41 = vmax.f32 %v662_v39, 0.0  ;;  %1719 = vmatprep.subr.bf16.mxu0 %v1844_v28 }
 0x102   : > { %v710_v42 = vpack.c.bf16 %v700_v40, %v699_v35  ;;  %v954_v40 = vshrl.u32 %v953_v37, 7 }
 0x103   : > { %v709_v43 = vpack.c.bf16 %v698_v41, %v697_v38  ;;  %v1689_v44 = vpop.f32.mrb[12].mxu0 }
 0x104   : > { %v683_v45 = vadd.f32 %v1689_v44, %v1579_v1  ;;  %v674_v46 = vpop.f32.mrb[13].mxu0  ;;  %1720 = vmatpush3.bf16.msra.mxu0 %v1844_v28  ;;  %v465_v44 = vld [vmem:[%s2334_s7] sm:$0x7] }
 0x105   : > { %1707 = vmatprep.mubr.msk.bf16.mxu1 %vm567_vm0, %v709_v43  ;;  %v675_v47 = vadd.f32 %v1579_v1, %v674_v46  ;;  %v1690_v48 = vpop.f32.mrb[14].mxu0  ;;  %1721 = vmatprep.subr.bf16.mxu0 %v1845_v30  ;;  %v955_v43 = vsub.s32 0, %v954_v40  ;;  %v1139_v46 = vsub.s32 2, %v954_v40 }
 0x106   : > { %1708 = vmatmul.mubr.msk.bf16.gmra.mrb[8].mxu1 %vm567_vm0, %v710_v42  ;;  %v703_v49 = vmax.f32 %v683_v45, 0.0  ;;  %v686_v50 = vadd.f32 %v1690_v48, %v1579_v1  ;;  %v677_v51 = vpop.f32.mrb[15].mxu0  ;;  %v1039_v42 = vsub.s32 1, %v954_v40 }
 0x107   : > { %v701_v52 = vmax.f32 %v675_v47, 0.0  ;;  %v678_v53 = vadd.f32 %v1579_v1, %v677_v51  ;;  %v2190_v51 = vrot.slane %v465_v44, %v1139_v46 }
 0x108   : > { %v704_v54 = vmax.f32 %v686_v50, 0.0  ;;  %1722 = vmatpush3.bf16.msra.mxu0 %v1845_v30  ;;  %v2185_v47 = vrot.slane %v465_v44, %v1039_v42 }
 0x109   : > { %v702_v55 = vmax.f32 %v678_v53, 0.0 }
 0x10a   : > { %v712_v56 = vpack.c.bf16 %v704_v54, %v703_v49  ;;  %v2187_v49 = vrot.slane %v465_v44, %v955_v43 }
 0x10b   : > { %v711_v57 = vpack.c.bf16 %v702_v55, %v701_v52 }
 0x10d   : > { %1711 = vmatprep.mubr.msk.bf16.mxu1 %vm567_vm0, %v711_v57 }
 0x10e   : > { %1712 = vmatmul.mubr.msk.bf16.gmra.mrb[12].mxu1 %vm567_vm0, %v712_v56 }
 0x1c9   : > { %v1701_v61 = vpop.f32.mrb[0].mxu1 }
 0x1ca   : > { %v819_v62 = vadd.f32 %v1701_v61, %v2078_v60  ;;  %v810_v63 = vpop.f32.mrb[1].mxu1 }
 0x1cb   : > { %v1702_v0 = vpop.f32.mrb[2].mxu1  ;;  %v811_v2 = vadd.f32 %v2078_v60, %v810_v63 }
 0x1cc   : > { %1082 = vperm.xlu1 %1790, %v819_v62   ;;  %885 = vperm.xlu0 %1788, %v819_v62   ;;  %v813_v1 = vpop.f32.mrb[3].mxu1  ;;  %v822_v9 = vadd.f32 %v1702_v0, %v2078_v60 }
 0x1cd   : > { %v814_v8 = vadd.f32 %v2078_v60, %v813_v1 }
 0x1d0   : > { %1792 = vset.pattern.permute.xlu1 %v1872_v3  ;;  %1789 = vset.pattern.permute.xlu0 %v1872_v3 }
 0x1d1   : > { %982 = vperm.xlu0 %1789, %v819_v62   ;;  %974 = vperm.xlu1 %1792, %v811_v2   ;;  %v1705_v4 = vpop.f32.mrb[4].mxu1 }
 0x1d2   : > { %v826_v5 = vpop.f32.mrb[5].mxu1  ;;  %v835_v16 = vadd.f32 %v1705_v4, %v2078_v60 }
 0x1d3   : > { %v1706_v6 = vpop.f32.mrb[6].mxu1  ;;  %v827_v24 = vadd.f32 %v2078_v60, %v826_v5 }
 0x1d4   : > { %v829_v7 = vpop.f32.mrb[7].mxu1  ;;  %v838_v29 = vadd.f32 %v1706_v6, %v2078_v60 }
 0x1d5   : > { %1791 = vset.pattern.permute.xlu0 %v1871_v59  ;;  %1793 = vset.pattern.permute.xlu1 %v1870_v58  ;;  %v830_v31 = vadd.f32 %v2078_v60, %v829_v7 }
 0x1d6   : > { %1074 = vperm.xlu1 %1793, %v811_v2   ;;  %875 = vperm.xlu0 %1791, %v811_v2  }
 0x1d9   : > { %v1709_v10 = vpop.f32.mrb[8].mxu1 }
 0x1da   : > { %1794 = vset.pattern.permute.xlu1 %v1871_v59  ;;  %880 = vperm.xlu0 %1791, %v814_v8   ;;  %v842_v11 = vpop.f32.mrb[9].mxu1  ;;  %v851_v32 = vadd.f32 %v1709_v10, %v2078_v60 }
 0x1db   : > { %890 = vperm.xlu1 %1794, %v822_v9   ;;  %v2090_v12 = vadd.f32 %v2078_v60, %v842_v11  ;;  %v1710_v13 = vpop.f32.mrb[10].mxu1 }
 0x1dc   : > { %v2093_v14 = vadd.f32 %v1710_v13, %v2078_v60  ;;  %v845_v15 = vpop.f32.mrb[11].mxu1 }
 0x1dd   : > { %v846_v33 = vadd.f32 %v2078_v60, %v845_v15 }
 0x1de   : > { %1798 = vset.pattern.permute.xlu0 %v1870_v58 }
 0x1df   : > { %1795 = vset.pattern.permute.xlu1 %v1872_v3  ;;  %1078 = vperm.xlu0 %1798, %v814_v8  }
 0x1e0   : > { %986 = vperm.xlu1 %1795, %v822_v9  }
 0x1e1   : > { %v1713_v17 = vpop.f32.mrb[12].mxu1 }
 0x1e2   : > { %v2099_v18 = vadd.f32 %v1713_v17, %v2078_v60  ;;  %v858_v19 = vpop.f32.mrb[13].mxu1 }
 0x1e3   : > { %1800 = vset.pattern.permute.xlu0 %v1872_v3  ;;  %v2103_v20 = vadd.f32 %v2078_v60, %v858_v19  ;;  %v1714_v21 = vpop.f32.mrb[14].mxu1 }
 0x1e4   : > { %1796 = vset.pattern.permute.xlu1 %v1870_v58  ;;  %998 = vperm.xlu0 %1800, %v835_v16   ;;  %v2107_v22 = vadd.f32 %v1714_v21, %v2078_v60  ;;  %v861_v23 = vpop.f32.mrb[15].mxu1 }
 0x1e5   : > { %1086 = vperm.xlu1 %1796, %v822_v9   ;;  %v2111_v25 = vadd.f32 %v2078_v60, %v861_v23 }
 0x1e8   : > { %1802 = vset.pattern.permute.xlu0 %v1871_v59 }
 0x1e9   : > { %1797 = vset.pattern.permute.xlu1 %v1872_v3  ;;  %895 = vperm.xlu0 %1802, %v827_v24  }
 0x1ea   : > { %978 = vperm.xlu1 %1797, %v814_v8   ;;  %v2206_v8 = vld [vmem:[%s448_s18] ss:$0 sm:$0xff] }
 0x1ed   : > { %1804 = vset.pattern.permute.xlu0 %v1870_v58 }
 0x1ee   : > { %1799 = vset.pattern.permute.xlu1 %v1871_v59  ;;  %1090 = vperm.xlu0 %1804, %v827_v24  }
 0x1ef   : > { %905 = vperm.xlu1 %1799, %v835_v16  }
 0x1f2   : > { %1102 = vperm.xlu0 %1804, %v838_v29  }
 0x1f3   : > { %1801 = vset.pattern.permute.xlu1 %v1870_v58 }
 0x1f4   : > { %1098 = vperm.xlu1 %1801, %v835_v16  }
 0x1f6   : > { %1808 = vset.pattern.permute.xlu0 %v1872_v3 }
 0x1f7   : > { %994 = vperm.xlu0 %1808, %v830_v31  }
 0x1f8   : > { %1803 = vset.pattern.permute.xlu1 %v1872_v3 }
 0x1f9   : > { %990 = vperm.xlu1 %1803, %v827_v24  }
 0x1fb   : > { %1810 = vset.pattern.permute.xlu0 %v1871_v59 }
 0x1fc   : > { %925 = vperm.xlu0 %1810, %v851_v32  }
 0x1fd   : > { %1805 = vset.pattern.permute.xlu1 %v1871_v59 }
 0x1fe   : > { %910 = vperm.xlu1 %1805, %v838_v29  }
 0x200   : > { %1811 = vset.pattern.permute.xlu0 %v1872_v3 }
 0x201   : > { %1014 = vperm.xlu0 %1811, %v851_v32  }
 0x202   : > { %1806 = vset.pattern.permute.xlu1 %v1872_v3 }
 0x203   : > { %1002 = vperm.xlu1 %1806, %v838_v29  }
 0x205   : > { %1818 = vset.pattern.permute.xlu0 %v1871_v59 }
 0x206   : > { %920 = vperm.xlu0 %1818, %v846_v33  }
 0x207   : > { %1807 = vset.pattern.permute.xlu1 %v1871_v59 }
 0x208   : > { %900 = vperm.xlu1 %1807, %v830_v31  }
 0x20a   : > { %1820 = vset.pattern.permute.xlu0 %v1870_v58 }
 0x20b   : > { %1110 = vperm.xlu0 %1820, %v846_v33  }
 0x20c   : > { %1809 = vset.pattern.permute.xlu1 %v1870_v58 }
 0x20d   : > { %1094 = vperm.xlu1 %1809, %v830_v31  }
 0x20f   : > { %1822 = vset.pattern.permute.xlu0 %v1872_v3 }
 0x210   : > { %1030 = vperm.xlu0 %1822, %v2099_v18  }
 0x211   : > { %1114 = vperm.xlu1 %1809, %v851_v32  }
 0x214   : > { %1823 = vset.pattern.permute.xlu0 %v1871_v59 }
 0x215   : > { %1812 = vset.pattern.permute.xlu1 %v1871_v59  ;;  %935 = vperm.xlu0 %1823, %v2103_v20  }
 0x216   : > { %915 = vperm.xlu1 %1812, %v2090_v12  }
 0x219   : > { %1825 = vset.pattern.permute.xlu0 %v1870_v58 }
 0x21a   : > { %1813 = vset.pattern.permute.xlu1 %v1872_v3  ;;  %1122 = vperm.xlu0 %1825, %v2103_v20  }
 0x21b   : > { %1006 = vperm.xlu1 %1813, %v2090_v12  }
 0x21e   : > { %1829 = vset.pattern.permute.xlu0 %v1872_v3 }
 0x21f   : > { %1814 = vset.pattern.permute.xlu1 %v1870_v58  ;;  %1026 = vperm.xlu0 %1829, %v2111_v25  }
 0x220   : > { %1106 = vperm.xlu1 %1814, %v2090_v12  }
 0x223   : > { %1831 = vset.pattern.permute.xlu0 %v1870_v58 }
 0x224   : > { %1815 = vset.pattern.permute.xlu1 %v1871_v59  ;;  %1134 = vperm.xlu0 %1831, %v2107_v22  }
 0x225   : > { %930 = vperm.xlu1 %1815, %v2093_v14  }
 0x228   : > { %1833 = vset.pattern.permute.xlu0 %v1871_v59 }
 0x229   : > { %1816 = vset.pattern.permute.xlu1 %v1872_v3 }
 0x22a   : > { %1018 = vperm.xlu1 %1816, %v2093_v14  }
 0x22e   : > { %1817 = vset.pattern.permute.xlu1 %v1870_v58 }
 0x22f   : > { %1118 = vperm.xlu1 %1817, %v2093_v14  }
 0x233   : > { %1819 = vset.pattern.permute.xlu1 %v1872_v3 }
 0x234   : > { %1010 = vperm.xlu1 %1819, %v846_v33  }
 0x238   : > { %1821 = vset.pattern.permute.xlu1 %v1871_v59 }
 0x239   : > { %945 = vperm.xlu1 %1821, %v2099_v18  }
 0x23d   : > { %1824 = vset.pattern.permute.xlu1 %v1872_v3 }
 0x23e   : > { %1022 = vperm.xlu1 %1824, %v2103_v20  }
 0x242   : > { %1826 = vset.pattern.permute.xlu1 %v1871_v59 }
 0x243   : > { %950 = vperm.xlu1 %1826, %v2107_v22  }
 0x247   : > { %1827 = vset.pattern.permute.xlu1 %v1872_v3 }
 0x248   : > { %1034 = vperm.xlu1 %1827, %v2107_v22  }
 0x24b   : > { %v1083_v34 = vpop.permute.xlu1 %1082  ;;  %v886_v36 = vpop.permute.xlu0 %885 }
 0x24c   : > { %1828 = vset.pattern.permute.xlu1 %v1871_v59  ;;  %v959_v57 = vmul.f32 %v2187_v49, %v886_v36  ;;  %v1143_v0 = vmul.f32 %v2190_v51, %v1083_v34 }
 0x24d   : > { %940 = vperm.xlu1 %1828, %v2111_v25  }
 0x250   : > { %v975_v35 = vpop.permute.xlu1 %974  ;;  %v983_v39 = vpop.permute.xlu0 %982 }
 0x251   : > { %1830 = vset.pattern.permute.xlu1 %v1870_v58  ;;  %v1043_v52 = vmul.f32 %v2185_v47, %v983_v39  ;;  %v1041_v55 = vmul.f32 %v2185_v47, %v975_v35 }
 0x252   : > { %1126 = vperm.xlu1 %1830, %v2111_v25  }
 0x253   : > { %v1059_v61 = vadd.f32 %v1043_v52, %v959_v57 }
 0x255   : > { %v1075_v38 = vpop.permute.xlu1 %1074  ;;  %v876_v45 = vpop.permute.xlu0 %875  ;;  %v1159_v7 = vadd.f32 %v1143_v0, %v1059_v61 }
 0x256   : > { %1130 = vperm.xlu1 %1830, %v2099_v18   ;;  %v957_v50 = vmul.f32 %v2187_v49, %v876_v45  ;;  %v1141_v63 = vmul.f32 %v2190_v51, %v1075_v38 }
 0x257   : > { %v1181_v15 = vadd.f32 %v2206_v8, %v1159_v7 }
 0x258   : > { %v1057_v60 = vadd.f32 %v1041_v55, %v957_v50 }
 0x259   : > { %v881_v53 = vpop.permute.xlu0 %880  ;;  %v1197_v21 = vmax.f32 %v1181_v15, 0.0 }
 0x25a   : > { %v891_v41 = vpop.permute.xlu1 %890  ;;  %1832 = vset.pattern.permute.xlu1 %v1871_v59  ;;  %v1157_v4 = vadd.f32 %v1141_v63, %v1057_v60  ;;  %v958_v5 = vmul.f32 %v2187_v49, %v881_v53 }
 0x25b   : > { %v960_v58 = vmul.f32 %v2187_v49, %v891_v41 }
 0x25c   : > { %v1179_v12 = vadd.f32 %v2206_v8, %v1157_v4 }
 0x25e   : > { %v1079_v1 = vpop.permute.xlu0 %1078  ;;  %v1195_v19 = vmax.f32 %v1179_v12, 0.0 }
 0x25f   : > { %v987_v48 = vpop.permute.xlu1 %986  ;;  %v1142_v9 = vmul.f32 %v2190_v51, %v1079_v1 }
 0x260   : > { %v1044_v54 = vmul.f32 %v2185_v47, %v987_v48 }
 0x262   : > { %v1060_v62 = vadd.f32 %v1044_v54, %v960_v58 }
 0x263   : > { %v999_v16 = vpop.permute.xlu0 %998 }
 0x264   : > { %v1087_v56 = vpop.permute.xlu1 %1086  ;;  %v1047_v39 = vmul.f32 %v2185_v47, %v999_v16 }
 0x265   : > { %v1144_v59 = vmul.f32 %v2190_v51, %v1087_v56 }
 0x267   : > { %v1160_v2 = vadd.f32 %v1144_v59, %v1060_v62 }
 0x268   : > { %v896_v25 = vpop.permute.xlu0 %895 }
 0x269   : > { %v979_v3 = vpop.permute.xlu1 %978  ;;  %v1182_v11 = vadd.f32 %v2206_v8, %v1160_v2  ;;  %v961_v34 = vmul.f32 %v2187_v49, %v896_v25 }
 0x26a   : > { %v1042_v6 = vmul.f32 %v2185_v47, %v979_v3 }
 0x26b   : > { %v1198_v18 = vmax.f32 %v1182_v11, 0.0 }
 0x26c   : > { %v1058_v10 = vadd.f32 %v1042_v6, %v958_v5 }
 0x26d   : > { %v1212_v24 = vpack.c.bf16 %v1198_v18, %v1197_v21  ;;  %v1091_v27 = vpop.permute.xlu0 %1090 }
 0x26e   : > { %v1158_v13 = vadd.f32 %v1142_v9, %v1058_v10  ;;  %v906_v14 = vpop.permute.xlu1 %905  ;;  %v1145_v43 = vmul.f32 %v2190_v51, %v1091_v27 }
 0x26f   : > { %v963_v35 = vmul.f32 %v2187_v49, %v906_v14 }
 0x270   : > { %v1180_v17 = vadd.f32 %v2206_v8, %v1158_v13 }
 0x271   : > { %v1103_v29 = vpop.permute.xlu0 %1102  ;;  %v1063_v45 = vadd.f32 %v1047_v39, %v963_v35 }
 0x272   : > { %v1196_v20 = vmax.f32 %v1180_v17, 0.0  ;;  %v1148_v40 = vmul.f32 %v2190_v51, %v1103_v29 }
 0x273   : > { %v1099_v22 = vpop.permute.xlu1 %1098 }
 0x274   : > { %v1211_v23 = vpack.c.bf16 %v1196_v20, %v1195_v19  ;;  %v1147_v41 = vmul.f32 %v2190_v51, %v1099_v22 }
 0x276   : > { %1723 = vmatprep.mubr.msk.bf16.mxu0 %vm567_vm0, %v1211_v23  ;;  %v995_v42 = vpop.permute.xlu0 %994  ;;  %v1163_v52 = vadd.f32 %v1147_v41, %v1063_v45 }
 0x277   : > { %1724 = vmatmul.mubr.msk.bf16.vlgmr.msra.gmra.mrb[16].mxu0 %vm567_vm0, %v1212_v24  ;;  %v1046_v48 = vmul.f32 %v2185_v47, %v995_v42 }
 0x278   : > { %v991_v26 = vpop.permute.xlu1 %990  ;;  %v1185_v59 = vadd.f32 %v2206_v8, %v1163_v52 }
 0x279   : > { %v1045_v31 = vmul.f32 %v2185_v47, %v991_v26 }
 0x27a   : > { %v1201_v1 = vmax.f32 %v1185_v59, 0.0 }
 0x27b   : > { %v1061_v37 = vadd.f32 %v1045_v31, %v961_v34  ;;  %v926_v7 = vpop.permute.xlu0 %925 }
 0x27c   : > { %v967_v16 = vmul.f32 %v2187_v49, %v926_v7 }
 0x27d   : > { %v911_v28 = vpop.permute.xlu1 %910  ;;  %v1161_v50 = vadd.f32 %v1145_v43, %v1061_v37 }
 0x27e   : > { %v964_v33 = vmul.f32 %v2187_v49, %v911_v28 }
 0x27f   : > { %v1183_v57 = vadd.f32 %v2206_v8, %v1161_v50 }
 0x280   : > { %v1015_v10 = vpop.permute.xlu0 %1014 }
 0x281   : > { %v1199_v63 = vmax.f32 %v1183_v57, 0.0  ;;  %v1051_v17 = vmul.f32 %v2185_v47, %v1015_v10 }
 0x282   : > { %v1003_v30 = vpop.permute.xlu1 %1002 }
 0x283   : > { %v1048_v32 = vmul.f32 %v2185_v47, %v1003_v30  ;;  %v1067_v26 = vadd.f32 %v1051_v17, %v967_v16 }
 0x285   : > { %v1064_v36 = vadd.f32 %v1048_v32, %v964_v33  ;;  %v921_v12 = vpop.permute.xlu0 %920 }
 0x286   : > { %v966_v29 = vmul.f32 %v2187_v49, %v921_v12 }
 0x287   : > { %v901_v38 = vpop.permute.xlu1 %900  ;;  %v1164_v46 = vadd.f32 %v1148_v40, %v1064_v36 }
 0x288   : > { %v962_v44 = vmul.f32 %v2187_v49, %v901_v38 }
 0x289   : > { %v1186_v56 = vadd.f32 %v2206_v8, %v1164_v46 }
 0x28a   : > { %v1062_v54 = vadd.f32 %v1046_v48, %v962_v44  ;;  %v1111_v24 = vpop.permute.xlu0 %1110 }
 0x28b   : > { %v1202_v62 = vmax.f32 %v1186_v56, 0.0  ;;  %v1150_v33 = vmul.f32 %v2190_v51, %v1111_v24 }
 0x28c   : > { %v1095_v53 = vpop.permute.xlu1 %1094 }
 0x28d   : > { %v1146_v55 = vmul.f32 %v2190_v51, %v1095_v53  ;;  %v1214_v4 = vpack.c.bf16 %v1202_v62, %v1201_v1 }
 0x28f   : > { %v1162_v58 = vadd.f32 %v1146_v55, %v1062_v54  ;;  %v1031_v34 = vpop.permute.xlu0 %1030 }
 0x290   : > { %v1115_v60 = vpop.permute.xlu1 %1114  ;;  %v1055_v12 = vmul.f32 %v2185_v47, %v1031_v34 }
 0x291   : > { %v1184_v61 = vadd.f32 %v2206_v8, %v1162_v58  ;;  %v1151_v22 = vmul.f32 %v2190_v51, %v1115_v60 }
 0x293   : > { %v1200_v0 = vmax.f32 %v1184_v61, 0.0  ;;  %v1167_v32 = vadd.f32 %v1151_v22, %v1067_v26 }
 0x294   : > { %v936_v44 = vpop.permute.xlu0 %935 }
 0x295   : > { %v1213_v2 = vpack.c.bf16 %v1200_v0, %v1199_v63  ;;  %v916_v3 = vpop.permute.xlu1 %915  ;;  %v1189_v40 = vadd.f32 %v2206_v8, %v1167_v32  ;;  %v969_v58 = vmul.f32 %v2187_v49, %v936_v44 }
 0x296   : > { %v965_v20 = vmul.f32 %v2187_v49, %v916_v3 }
 0x297   : > { %1727 = vmatprep.mubr.msk.bf16.mxu0 %vm567_vm0, %v1213_v2  ;;  %v1205_v46 = vmax.f32 %v1189_v40, 0.0 }
 0x298   : > { %1728 = vmatmul.mubr.msk.bf16.gmra.mrb[20].mxu0 %vm567_vm0, %v1214_v4 }
 0x299   : > { %v1123_v53 = vpop.permute.xlu0 %1122 }
 0x29a   : > { %v1007_v5 = vpop.permute.xlu1 %1006  ;;  %v1153_v62 = vmul.f32 %v2190_v51, %v1123_v53 }
 0x29b   : > { %v1049_v14 = vmul.f32 %v2185_v47, %v1007_v5 }
 0x29d   : > { %v1065_v25 = vadd.f32 %v1049_v14, %v965_v20 }
 0x29e   : > { %v1027_v56 = vpop.permute.xlu0 %1026 }
 0x29f   : > { %v1107_v6 = vpop.permute.xlu1 %1106  ;;  %v1054_v2 = vmul.f32 %v2185_v47, %v1027_v56 }
 0x2a0   : > { %v1149_v21 = vmul.f32 %v2190_v51, %v1107_v6 }
 0x2a2   : > { %v1165_v30 = vadd.f32 %v1149_v21, %v1065_v25 }
 0x2a3   : > { %v1135_v63 = vpop.permute.xlu0 %1134 }
 0x2a4   : > { %v931_v9 = vpop.permute.xlu1 %930  ;;  %v1187_v37 = vadd.f32 %v2206_v8, %v1165_v30  ;;  %v1156_v5 = vmul.f32 %v2190_v51, %v1135_v63 }
 0x2a5   : > { %v968_v18 = vmul.f32 %v2187_v49, %v931_v9 }
 0x2a6   : > { %v1203_v43 = vmax.f32 %v1187_v37, 0.0 }
 0x2a9   : > { %v1019_v11 = vpop.permute.xlu1 %1018 }
 0x2aa   : > { %v1052_v13 = vmul.f32 %v2185_v47, %v1019_v11  ;;  %v1873_v11 = vmov 0.0  }
 0x2ab   : > { %1739 = vmatprep.subr.bf16.mxu1 %v1873_v11  ;;  %1755 = vmatprep.mubr.msk.bf16.mxu1 %vm1874_vm1, %v1873_v11 }
 0x2ac   : > { %v1068_v23 = vadd.f32 %v1052_v13, %v968_v18 }
 0x2ae   : > { %v1119_v15 = vpop.permute.xlu1 %1118 }
 0x2af   : > { %v1152_v19 = vmul.f32 %v2190_v51, %v1119_v15 }
 0x2b1   : > { %v1168_v27 = vadd.f32 %v1152_v19, %v1068_v23 }
 0x2b3   : > { %v1011_v28 = vpop.permute.xlu1 %1010  ;;  %v1190_v36 = vadd.f32 %v2206_v8, %v1168_v27 }
 0x2b4   : > { %v1050_v31 = vmul.f32 %v2185_v47, %v1011_v28 }
 0x2b5   : > { %v1206_v42 = vmax.f32 %v1190_v36, 0.0 }
 0x2b6   : > { %v1066_v35 = vadd.f32 %v1050_v31, %v966_v29 }
 0x2b7   : > { %v1216_v52 = vpack.c.bf16 %v1206_v42, %v1205_v46 }
 0x2b8   : > { %v1166_v38 = vadd.f32 %v1150_v33, %v1066_v35  ;;  %v946_v39 = vpop.permute.xlu1 %945  ;;  %v1404_v33 = vld [vmem:[%s2338_s11] sm:$0x7] }
 0x2b9   : > { %v971_v7 = vmul.f32 %v2187_v49, %v946_v39  ;;  %1407 = vperm.xlu1 %1832, %v1404_v33  }
 0x2ba   : > { %v1188_v41 = vadd.f32 %v2206_v8, %v1166_v38 }
 0x2bb   : > { %v1071_v17 = vadd.f32 %v1055_v12, %v971_v7 }
 0x2bc   : > { %v1204_v45 = vmax.f32 %v1188_v41, 0.0 }
 0x2bd   : > { %v1023_v48 = vpop.permute.xlu1 %1022 }
 0x2be   : > { %v1215_v50 = vpack.c.bf16 %v1204_v45, %v1203_v43  ;;  %v1053_v57 = vmul.f32 %v2185_v47, %v1023_v48 }
 0x2c0   : > { %1731 = vmatprep.mubr.msk.bf16.mxu0 %vm567_vm0, %v1215_v50  ;;  %v1069_v59 = vadd.f32 %v1053_v57, %v969_v58 }
 0x2c1   : > { %1732 = vmatmul.mubr.msk.bf16.gmra.mrb[24].mxu0 %vm567_vm0, %v1216_v52 }
 0x2c2   : > { %v951_v54 = vpop.permute.xlu1 %950  ;;  %v1169_v3 = vadd.f32 %v1153_v62, %v1069_v59 }
 0x2c3   : > { %v972_v0 = vmul.f32 %v2187_v49, %v951_v54 }
 0x2c4   : > { %v1191_v13 = vadd.f32 %v2206_v8, %v1169_v3 }
 0x2c6   : > { %v1207_v20 = vmax.f32 %v1191_v13, 0.0 }
 0x2c7   : > { %v1035_v55 = vpop.permute.xlu1 %1034 }
 0x2c8   : > { %v1056_v60 = vmul.f32 %v2185_v47, %v1035_v55 }
 0x2ca   : > { %v1072_v4 = vadd.f32 %v1056_v60, %v972_v0 }
 0x2cc   : > { %v941_v61 = vpop.permute.xlu1 %940  ;;  %v1172_v14 = vadd.f32 %v1156_v5, %v1072_v4 }
 0x2cd   : > { %v970_v1 = vmul.f32 %v2187_v49, %v941_v61 }
 0x2ce   : > { %v1194_v49 = vadd.f32 %v2206_v8, %v1172_v14 }
 0x2cf   : > { %v1070_v9 = vadd.f32 %v1054_v2, %v970_v1 }
 0x2d0   : > { %v1210_v25 = vmax.f32 %v1194_v49, 0.0 }
 0x2d1   : > { %v1127_v6 = vpop.permute.xlu1 %1126 }
 0x2d2   : > { %v1154_v10 = vmul.f32 %v2190_v51, %v1127_v6 }
 0x2d4   : > { %v1170_v15 = vadd.f32 %v1154_v10, %v1070_v9 }
 0x2d5   : > { %v1131_v16 = vpop.permute.xlu1 %1130 }
 0x2d6   : > { %v1192_v18 = vadd.f32 %v2206_v8, %v1170_v15  ;;  %v1155_v19 = vmul.f32 %v2190_v51, %v1131_v16  ;;  %v2274_v51 = vld [vmem:[%s2336_s9] ss:$0 sm:$0xff] }
 0x2d8   : > { %v1208_v21 = vmax.f32 %v1192_v18, 0.0  ;;  %v1171_v22 = vadd.f32 %v1155_v19, %v1071_v17 }
 0x2da   : > { %v1217_v23 = vpack.c.bf16 %v1208_v21, %v1207_v20  ;;  %v1193_v24 = vadd.f32 %v2206_v8, %v1171_v22 }
 0x2dc   : > { %v1209_v47 = vmax.f32 %v1193_v24, 0.0  ;;  %1735 = vmatprep.mubr.msk.bf16.mxu0 %vm567_vm0, %v1217_v23 }
 0x2de   : > { %v1218_v26 = vpack.c.bf16 %v1210_v25, %v1209_v47 }
 0x2e0   : > { %1736 = vmatmul.mubr.msk.bf16.gmra.mrb[28].mxu0 %vm567_vm0, %v1218_v26 }
 0x34a   : > { %v1725_v27 = vpop.f32.mrb[16].mxu0 }
 0x34b   : > { %v1325_v28 = vadd.f32 %v1725_v27, %v2274_v51  ;;  %v1316_v29 = vpop.f32.mrb[17].mxu0 }
 0x34c   : > { %v1317_v8 = vadd.f32 %v2274_v51, %v1316_v29  ;;  %v1726_v30 = vpop.f32.mrb[18].mxu0 }
 0x34d   : > { %v1328_v31 = vadd.f32 %v1726_v30, %v2274_v51  ;;  %v1319_v32 = vpop.f32.mrb[19].mxu0  ;;  %v1381_v35 = vmax.f32 %v1325_v28, 0.0 }
 0x34e   : > { %v1320_v34 = vadd.f32 %v2274_v51, %v1319_v32  ;;  %v1379_v37 = vmax.f32 %v1317_v8, 0.0  ;;  %v1395_v8 = vld [vmem:[%s2337_s10] sm:$0x3] }
 0x34f   : > { %v1382_v36 = vmax.f32 %v1328_v31, 0.0 }
 0x350   : > { %v1380_v38 = vmax.f32 %v1320_v34, 0.0 }
 0x351   : > { %v1397_v39 = vpack.c.bf16 %v1382_v36, %v1381_v35 }
 0x352   : > { %v1396_v40 = vpack.c.bf16 %v1380_v38, %v1379_v37 }
 0x353   : > { %v1417_v42 = vsel %vm567_vm0, %v1397_v39, 0 }
 0x354   : > { %v1414_v41 = vsel %vm567_vm0, %v1396_v40, 0 }
 0x355   : > { %1740 = vmatpush3.bf16.xpose.msra.mxu1 %v1414_v41 }
 0x356   : > { %1741 = vmatprep.subr.bf16.mxu1 %v1873_v11 }
 0x35d   : > { %1742 = vmatpush3.bf16.xpose.msra.mxu1 %v1417_v42 }
 0x35e   : > { %1743 = vmatprep.subr.bf16.mxu1 %v1873_v11 }
 0x36b   : > { %v1729_v43 = vpop.f32.mrb[20].mxu0 }
 0x36c   : > { %v1341_v44 = vadd.f32 %v1729_v43, %v2274_v51  ;;  %v1332_v45 = vpop.f32.mrb[21].mxu0 }
 0x36d   : > { %v1333_v46 = vadd.f32 %v2274_v51, %v1332_v45  ;;  %v1730_v48 = vpop.f32.mrb[22].mxu0 }
 0x36e   : > { %v1344_v50 = vadd.f32 %v1730_v48, %v2274_v51  ;;  %v1335_v52 = vpop.f32.mrb[23].mxu0  ;;  %v1385_v54 = vmax.f32 %v1341_v44, 0.0 }
 0x36f   : > { %v1336_v53 = vadd.f32 %v2274_v51, %v1335_v52  ;;  %v1383_v56 = vmax.f32 %v1333_v46, 0.0 }
 0x370   : > { %v1386_v55 = vmax.f32 %v1344_v50, 0.0 }
 0x371   : > { %v1384_v57 = vmax.f32 %v1336_v53, 0.0 }
 0x372   : > { %v1399_v58 = vpack.c.bf16 %v1386_v55, %v1385_v54 }
 0x373   : > { %v1398_v59 = vpack.c.bf16 %v1384_v57, %v1383_v56 }
 0x374   : > { %v1423_v61 = vsel %vm567_vm0, %v1399_v58, 0 }
 0x375   : > { %v1420_v60 = vsel %vm567_vm0, %v1398_v59, 0 }
 0x376   : > { %1744 = vmatpush3.bf16.xpose.msra.mxu1 %v1420_v60 }
 0x377   : > { %1745 = vmatprep.subr.bf16.mxu1 %v1873_v11 }
 0x37e   : > { %1746 = vmatpush3.bf16.xpose.msra.mxu1 %v1423_v61 }
 0x37f   : > { %1747 = vmatprep.subr.bf16.mxu1 %v1873_v11 }
 0x394   : > { %v1733_v62 = vpop.f32.mrb[24].mxu0 }
 0x395   : > { %v1357_v63 = vadd.f32 %v1733_v62, %v2274_v51  ;;  %v1348_v0 = vpop.f32.mrb[25].mxu0 }
 0x396   : > { %v1349_v1 = vadd.f32 %v2274_v51, %v1348_v0  ;;  %v1734_v2 = vpop.f32.mrb[26].mxu0 }
 0x397   : > { %v1360_v3 = vadd.f32 %v1734_v2, %v2274_v51  ;;  %v1351_v4 = vpop.f32.mrb[27].mxu0  ;;  %v1389_v6 = vmax.f32 %v1357_v63, 0.0 }
 0x398   : > { %v1352_v5 = vadd.f32 %v2274_v51, %v1351_v4  ;;  %v1387_v9 = vmax.f32 %v1349_v1, 0.0 }
 0x399   : > { %v1390_v7 = vmax.f32 %v1360_v3, 0.0 }
 0x39a   : > { %v1388_v10 = vmax.f32 %v1352_v5, 0.0 }
 0x39b   : > { %v1401_v12 = vpack.c.bf16 %v1390_v7, %v1389_v6 }
 0x39c   : > { %v1400_v13 = vpack.c.bf16 %v1388_v10, %v1387_v9 }
 0x39d   : > { %v1429_v15 = vsel %vm567_vm0, %v1401_v12, 0 }
 0x39e   : > { %v1426_v14 = vsel %vm567_vm0, %v1400_v13, 0 }
 0x39f   : > { %1748 = vmatpush3.bf16.xpose.msra.mxu1 %v1426_v14 }
 0x3a0   : > { %1749 = vmatprep.subr.bf16.mxu1 %v1873_v11 }
 0x3a7   : > { %1750 = vmatpush3.bf16.xpose.msra.mxu1 %v1429_v15 }
 0x3a8   : > { %1751 = vmatprep.subr.bf16.mxu1 %v1873_v11 }
 0x3b3   : > { %v1737_v16 = vpop.f32.mrb[28].mxu0 }
 0x3b4   : > { %v1373_v17 = vadd.f32 %v1737_v16, %v2274_v51  ;;  %v1364_v18 = vpop.f32.mrb[29].mxu0 }
 0x3b5   : > { %v1365_v19 = vadd.f32 %v2274_v51, %v1364_v18  ;;  %v1738_v20 = vpop.f32.mrb[30].mxu0 }
 0x3b6   : > { %v1376_v49 = vadd.f32 %v1738_v20, %v2274_v51  ;;  %v1367_v21 = vpop.f32.mrb[31].mxu0  ;;  %v1393_v23 = vmax.f32 %v1373_v17, 0.0 }
 0x3b7   : > { %v1368_v22 = vadd.f32 %v2274_v51, %v1367_v21  ;;  %v1391_v25 = vmax.f32 %v1365_v19, 0.0  ;;  %v1408_v51 = vpop.permute.xlu1 %1407 }
 0x3b8   : > { %v1394_v24 = vmax.f32 %v1376_v49, 0.0 }
 0x3b9   : > { %v1392_v47 = vmax.f32 %v1368_v22, 0.0 }
 0x3ba   : > { %v1403_v26 = vpack.c.bf16 %v1394_v24, %v1393_v23 }
 0x3bb   : > { %v1402_v27 = vpack.c.bf16 %v1392_v47, %v1391_v25 }
 0x3bc   : > { %v1435_v29 = vsel %vm567_vm0, %v1403_v26, 0 }
 0x3bd   : > { %v1432_v28 = vsel %vm567_vm0, %v1402_v27, 0 }
 0x3be   : > { %1752 = vmatpush3.bf16.xpose.msra.mxu1 %v1432_v28 }
 0x3bf   : > { %1753 = vmatprep.subr.bf16.mxu1 %v1873_v11 }
 0x3c6   : > { %1754 = vmatpush3.bf16.xpose.msra.mxu1 %v1435_v29 }
 0x3cd   : > { %1756 = vmatmul.mubr.msk.bf16.vlgmr.msra.gmra.mrb[16].mxu1 %vm567_vm0, %v1395_v8 }
 0x4a0   : > { %v1471_v30 = vpop.f32.mrb[16].mxu1 }
 0x4a1   : > { %v1472_v31 = vadd.f32 %v1471_v30, %v1408_v51  ;;  %v1757_v32 = vpop.f32.mrb[17].mxu1 }
 0x4a2   : > { %v1474_v33 = vpop.f32.mrb[18].mxu1 }
 0x4a3   : > { %1477 = vst [vmem:[%s461_s14] sm:$0x7] %v1472_v31  ;;  %v1758_v11 = vpop.f32.mrb[19].mxu1 }
 0x4a4 PF: > { %s22_s23 = sadd.s32 1, %s1868_s23   ;;  %s2340_s21 = smov %s1864_s22 }
 0x4a5   : > { %p19_p5 = scmp.ge.s32.totalorder %s22_s23, 4   ;;  %s2341_s22 = smov %s2343_s24 }
 0x4a7   :  { %21 = sbr.rel (!%p19_p5) target bundleno = 2 (0x2), region = 104 }

</bundles_post_ra>
